<compile_context>
chip_gen: v7x
topology: tpu7x:2x2x1
jax: 0.10.0
libtpu: 0.0.40
codegen_flags: <defaults>
</compile_context>

<pallas_src>
import functools

import jax
import jax.numpy as jnp
from jax.experimental import pallas as pl
from jax.experimental.pallas import tpu as pltpu

BN_EPS = 1e-5
LANE = 128
USE_BF16_MATMUL = False  # TODO(synk): set True on v6e/v7x for large widths (~1e-3 rel err)


def _round_up(n, m):
    return ((n + m - 1) // m) * m


# ---------------------------------------------------------------------------
# Fused kernel: the entire MLP in one invocation (depth is static -> unrolled).
# Ref order: x, then per hidden layer (w, b, gamma, beta), final w, final b, out.
# ---------------------------------------------------------------------------
def _make_fused_kernel(n_hidden, use_bf16):
    def mm(a, b):
        if use_bf16:
            a = a.astype(jnp.bfloat16)
            b = b.astype(jnp.bfloat16)
        return jnp.dot(a, b, preferred_element_type=jnp.float32)

    def kernel(*refs):
        x_ref = refs[0]
        o_ref = refs[-1]

        h = x_ref[...].astype(jnp.float32)
        batch = h.shape[0]
        inv_n = 1.0 / batch
        # Row of ones (hoisted): pushes per-feature BN reductions onto the MXU
        # instead of the XLU sublane-reduce path.
        ones_row = jnp.ones((1, batch), jnp.float32)

        idx = 1
        for _ in range(n_hidden):
            w_ref, b_ref, g_ref, bt_ref = refs[idx:idx + 4]
            idx += 4
            # Linear (MXU, f32 accumulate) + bias
            h = mm(h, w_ref[...]) + b_ref[...]
            # ReLU (VPU)
            h = jnp.maximum(h, 0.0)
            # BatchNorm1d, single-pass batch statistics (per-feature, biased var)
            # computed on the MXU (f32), folded into one affine.
            s = jnp.dot(ones_row, h, preferred_element_type=jnp.float32)
            ssq = jnp.dot(ones_row, h * h, preferred_element_type=jnp.float32)
            mean = s * inv_n
            var = jnp.maximum(ssq * inv_n - mean * mean, 0.0)
            scale = jax.lax.rsqrt(var + BN_EPS) * g_ref[...]   # (1, F) row math
            shift = bt_ref[...] - mean * scale                 # (1, F) row math
            h = h * scale + shift

        w_ref, b_ref = refs[idx], refs[idx + 1]
        y = mm(h, w_ref[...]) + b_ref[...]
        o_ref[...] = y.astype(o_ref.dtype)

    return kernel


# ---------------------------------------------------------------------------
# Parameter construction (deterministic, PyTorch-style uniform init, unpadded)
# ---------------------------------------------------------------------------
def init_params(key, input_dim, width, depth, latent_dim):
    params = []

    def linear_init(k, fan_in, fan_out):
        kw, kb = jax.random.split(k)
        bound = 1.0 / jnp.sqrt(fan_in)
        w = jax.random.uniform(kw, (fan_in, fan_out), jnp.float32, -bound, bound)
        b = jax.random.uniform(kb, (1, fan_out), jnp.float32, -bound, bound)
        return w, b

    keys = jax.random.split(key, depth + 1)

    w, b = linear_init(keys[0], input_dim, width)
    params.append(dict(w=w, b=b,
                       gamma=jnp.ones((1, width), jnp.float32),
                       beta=jnp.zeros((1, width), jnp.float32)))

    for i in range(depth - 1):
        w, b = linear_init(keys[1 + i], width, width)
        params.append(dict(w=w, b=b,
                           gamma=jnp.ones((1, width), jnp.float32),
                           beta=jnp.zeros((1, width), jnp.float32)))

    w, b = linear_init(keys[depth], width, 2 * latent_dim)
    params.append(dict(w=w, b=b))

    return params


def prepare_params(params):
    """One-time preprocessing (hoisted out of the per-call forward):
    flatten the param tree and zero-pad ONLY the final layer's output dim to a
    128-lane multiple so the kernel's single HBM output store is lane-dense.
    Padded output columns are exact zeros and are sliced off after the call."""
    out_dim = params[-1]["w"].shape[1]
    out_pad = _round_up(out_dim, LANE)

    flat = []
    for layer in params[:-1]:
        flat.extend([layer["w"], layer["b"], layer["gamma"], layer["beta"]])
    w_last = params[-1]["w"]
    b_last = params[-1]["b"]
    flat.append(jnp.pad(w_last, ((0, 0), (0, out_pad - out_dim))))
    flat.append(jnp.pad(b_last, ((0, 0), (0, out_pad - out_dim))))
    return tuple(flat), out_dim


# ---------------------------------------------------------------------------
# Forward pass: single fused pallas_call, everything VMEM-resident.
# ---------------------------------------------------------------------------
@functools.partial(jax.jit, static_argnames=("out_dim",))
def mlp_recognition_net_forward(x, flat_params, *, out_dim):
    n_hidden = (len(flat_params) - 2) // 4
    batch = x.shape[0]
    out_pad = flat_params[-1].shape[-1]

    args = (x,) + tuple(flat_params)

    # Scoped-VMEM limit sized to the actual resident footprint + headroom
    # (v5e default is only 16 MiB); clamped to v7x's 64 MiB physical VMEM.
    arg_bytes = sum(int(a.size) * a.dtype.itemsize for a in args)
    out_bytes = batch * out_pad * 4
    act_bytes = 6 * batch * max(int(a.shape[-1]) for a in args) * 4
    vmem_limit = int(min(64 << 20,
                         max(32 << 20, arg_bytes + out_bytes + act_bytes + (8 << 20))))

    vmem_spec = pl.BlockSpec(memory_space=pltpu.MemorySpace.VMEM)
    out_padded = pl.pallas_call(
        _make_fused_kernel(n_hidden, USE_BF16_MATMUL),
        out_shape=jax.ShapeDtypeStruct((batch, out_pad), jnp.float32),
        in_specs=[vmem_spec] * len(args),
        out_specs=vmem_spec,
        compiler_params=pltpu.CompilerParams(vmem_limit_bytes=vmem_limit),
    )(*args)

    return out_padded[:, :out_dim]


# ---------------------------------------------------------------------------
# Pure-JAX reference (unpadded, two-pass BN) for sanity checking
# ---------------------------------------------------------------------------
def _reference_forward(x, params):
    h = x
    for layer in params[:-1]:
        h = jnp.maximum(h @ layer["w"] + layer["b"], 0.0)
        mean = jnp.mean(h, axis=0, keepdims=True)
        var = jnp.mean((h - mean) ** 2, axis=0, keepdims=True)
        h = (h - mean) / jnp.sqrt(var + BN_EPS) * layer["gamma"] + layer["beta"]
    last = params[-1]
    return h @ last["w"] + last["b"]


if __name__ == "__main__":
    # Small shapes consistent with the module's forward: x is (batch, input_dim)
    batch, input_dim, width, depth, latent_dim = 8, 16, 32, 3, 4

    key = jax.random.PRNGKey(0)
    k_params, k_x = jax.random.split(key)

    params = init_params(k_params, input_dim, width, depth, latent_dim)
    flat_params, out_dim = prepare_params(params)   # one-time, outside forward
    x = jax.random.normal(k_x, (batch, input_dim), jnp.float32)

    out = mlp_recognition_net_forward(x, flat_params, out_dim=out_dim)
    out = jax.block_until_ready(out)

    assert out.shape == (batch, 2 * latent_dim), out.shape

    ref = _reference_forward(x, params)
    if not jnp.allclose(out, ref, atol=1e-4, rtol=1e-4):
        raise AssertionError("Pallas output does not match reference")

    print("KERNEL_OK")
</pallas_src>

<mosaic_0001>
module attributes {stable_mosaic.version = 11 : i64} {
  func.func @kernel(%arg0: memref<8x16xf32, #tpu.memory_space<vmem>>, %arg1: memref<16x32xf32, #tpu.memory_space<vmem>>, %arg2: memref<1x32xf32, #tpu.memory_space<vmem>>, %arg3: memref<1x32xf32, #tpu.memory_space<vmem>>, %arg4: memref<1x32xf32, #tpu.memory_space<vmem>>, %arg5: memref<32x32xf32, #tpu.memory_space<vmem>>, %arg6: memref<1x32xf32, #tpu.memory_space<vmem>>, %arg7: memref<1x32xf32, #tpu.memory_space<vmem>>, %arg8: memref<1x32xf32, #tpu.memory_space<vmem>>, %arg9: memref<32x32xf32, #tpu.memory_space<vmem>>, %arg10: memref<1x32xf32, #tpu.memory_space<vmem>>, %arg11: memref<1x32xf32, #tpu.memory_space<vmem>>, %arg12: memref<1x32xf32, #tpu.memory_space<vmem>>, %arg13: memref<32x128xf32, #tpu.memory_space<vmem>>, %arg14: memref<1x128xf32, #tpu.memory_space<vmem>>, %arg15: memref<8x128xf32, #tpu.memory_space<vmem>>) attributes {dimension_semantics = [], scalar_prefetch = 0 : i64, scratch_operands = 0 : i64, tpu.core_type = #tpu.core_type<tc>} {
    %c0 = arith.constant 0 : index
    %c0_0 = arith.constant 0 : index
    %0 = vector.load %arg0[%c0, %c0_0] : memref<8x16xf32, #tpu.memory_space<vmem>>, vector<8x16xf32>
    %cst = arith.constant 1.000000e+00 : f32
    %1 = vector.broadcast %cst : f32 to vector<1x8xf32>
    %c0_1 = arith.constant 0 : index
    %c0_2 = arith.constant 0 : index
    %2 = vector.load %arg1[%c0_1, %c0_2] : memref<16x32xf32, #tpu.memory_space<vmem>>, vector<16x32xf32>
    %cst_3 = arith.constant dense<0.000000e+00> : vector<8x32xf32>
    %3 = tpu.matmul %0, %2, %cst_3 {dimension_numbers = #tpu.dot_dimension_numbers<[1], [0], [0], [1], [0, 0, 1, 1], [], []>} : vector<8x16xf32>, vector<16x32xf32>, vector<8x32xf32> -> vector<8x32xf32>
    %c0_4 = arith.constant 0 : index
    %c0_5 = arith.constant 0 : index
    %4 = vector.load %arg2[%c0_4, %c0_5] : memref<1x32xf32, #tpu.memory_space<vmem>>, vector<1x32xf32>
    %5 = vector.broadcast %4 : vector<1x32xf32> to vector<8x32xf32>
    %6 = arith.addf %3, %5 : vector<8x32xf32>
    %cst_6 = arith.constant 0.000000e+00 : f32
    %7 = vector.broadcast %cst_6 : f32 to vector<8x32xf32>
    %8 = arith.maximumf %6, %7 : vector<8x32xf32>
    %cst_7 = arith.constant dense<0.000000e+00> : vector<1x32xf32>
    %9 = tpu.matmul %1, %8, %cst_7 {dimension_numbers = #tpu.dot_dimension_numbers<[1], [0], [0], [1], [0, 0, 1, 1], [], []>} : vector<1x8xf32>, vector<8x32xf32>, vector<1x32xf32> -> vector<1x32xf32>
    %10 = arith.mulf %8, %8 : vector<8x32xf32>
    %cst_8 = arith.constant dense<0.000000e+00> : vector<1x32xf32>
    %11 = tpu.matmul %1, %10, %cst_8 {dimension_numbers = #tpu.dot_dimension_numbers<[1], [0], [0], [1], [0, 0, 1, 1], [], []>} : vector<1x8xf32>, vector<8x32xf32>, vector<1x32xf32> -> vector<1x32xf32>
    %cst_9 = arith.constant 1.250000e-01 : f32
    %12 = vector.broadcast %cst_9 : f32 to vector<1x32xf32>
    %13 = arith.mulf %9, %12 : vector<1x32xf32>
    %cst_10 = arith.constant 1.250000e-01 : f32
    %14 = vector.broadcast %cst_10 : f32 to vector<1x32xf32>
    %15 = arith.mulf %11, %14 : vector<1x32xf32>
    %16 = arith.mulf %13, %13 : vector<1x32xf32>
    %17 = arith.subf %15, %16 : vector<1x32xf32>
    %cst_11 = arith.constant 0.000000e+00 : f32
    %18 = vector.broadcast %cst_11 : f32 to vector<1x32xf32>
    %19 = arith.maximumf %17, %18 : vector<1x32xf32>
    %cst_12 = arith.constant 9.99999974E-6 : f32
    %20 = vector.broadcast %cst_12 : f32 to vector<1x32xf32>
    %21 = arith.addf %19, %20 : vector<1x32xf32>
    %22 = math.rsqrt %21 : vector<1x32xf32>
    %c0_13 = arith.constant 0 : index
    %c0_14 = arith.constant 0 : index
    %23 = vector.load %arg3[%c0_13, %c0_14] : memref<1x32xf32, #tpu.memory_space<vmem>>, vector<1x32xf32>
    %24 = arith.mulf %22, %23 : vector<1x32xf32>
    %c0_15 = arith.constant 0 : index
    %c0_16 = arith.constant 0 : index
    %25 = vector.load %arg4[%c0_15, %c0_16] : memref<1x32xf32, #tpu.memory_space<vmem>>, vector<1x32xf32>
    %26 = arith.mulf %13, %24 : vector<1x32xf32>
    %27 = arith.subf %25, %26 : vector<1x32xf32>
    %28 = vector.broadcast %24 : vector<1x32xf32> to vector<8x32xf32>
    %29 = arith.mulf %8, %28 : vector<8x32xf32>
    %30 = vector.broadcast %27 : vector<1x32xf32> to vector<8x32xf32>
    %31 = arith.addf %29, %30 : vector<8x32xf32>
    %c0_17 = arith.constant 0 : index
    %c0_18 = arith.constant 0 : index
    %32 = vector.load %arg5[%c0_17, %c0_18] : memref<32x32xf32, #tpu.memory_space<vmem>>, vector<32x32xf32>
    %cst_19 = arith.constant dense<0.000000e+00> : vector<8x32xf32>
    %33 = tpu.matmul %31, %32, %cst_19 {dimension_numbers = #tpu.dot_dimension_numbers<[1], [0], [0], [1], [0, 0, 1, 1], [], []>} : vector<8x32xf32>, vector<32x32xf32>, vector<8x32xf32> -> vector<8x32xf32>
    %c0_20 = arith.constant 0 : index
    %c0_21 = arith.constant 0 : index
    %34 = vector.load %arg6[%c0_20, %c0_21] : memref<1x32xf32, #tpu.memory_space<vmem>>, vector<1x32xf32>
    %35 = vector.broadcast %34 : vector<1x32xf32> to vector<8x32xf32>
    %36 = arith.addf %33, %35 : vector<8x32xf32>
    %cst_22 = arith.constant 0.000000e+00 : f32
    %37 = vector.broadcast %cst_22 : f32 to vector<8x32xf32>
    %38 = arith.maximumf %36, %37 : vector<8x32xf32>
    %cst_23 = arith.constant dense<0.000000e+00> : vector<1x32xf32>
    %39 = tpu.matmul %1, %38, %cst_23 {dimension_numbers = #tpu.dot_dimension_numbers<[1], [0], [0], [1], [0, 0, 1, 1], [], []>} : vector<1x8xf32>, vector<8x32xf32>, vector<1x32xf32> -> vector<1x32xf32>
    %40 = arith.mulf %38, %38 : vector<8x32xf32>
    %cst_24 = arith.constant dense<0.000000e+00> : vector<1x32xf32>
    %41 = tpu.matmul %1, %40, %cst_24 {dimension_numbers = #tpu.dot_dimension_numbers<[1], [0], [0], [1], [0, 0, 1, 1], [], []>} : vector<1x8xf32>, vector<8x32xf32>, vector<1x32xf32> -> vector<1x32xf32>
    %cst_25 = arith.constant 1.250000e-01 : f32
    %42 = vector.broadcast %cst_25 : f32 to vector<1x32xf32>
    %43 = arith.mulf %39, %42 : vector<1x32xf32>
    %cst_26 = arith.constant 1.250000e-01 : f32
    %44 = vector.broadcast %cst_26 : f32 to vector<1x32xf32>
    %45 = arith.mulf %41, %44 : vector<1x32xf32>
    %46 = arith.mulf %43, %43 : vector<1x32xf32>
    %47 = arith.subf %45, %46 : vector<1x32xf32>
    %cst_27 = arith.constant 0.000000e+00 : f32
    %48 = vector.broadcast %cst_27 : f32 to vector<1x32xf32>
    %49 = arith.maximumf %47, %48 : vector<1x32xf32>
    %cst_28 = arith.constant 9.99999974E-6 : f32
    %50 = vector.broadcast %cst_28 : f32 to vector<1x32xf32>
    %51 = arith.addf %49, %50 : vector<1x32xf32>
    %52 = math.rsqrt %51 : vector<1x32xf32>
    %c0_29 = arith.constant 0 : index
    %c0_30 = arith.constant 0 : index
    %53 = vector.load %arg7[%c0_29, %c0_30] : memref<1x32xf32, #tpu.memory_space<vmem>>, vector<1x32xf32>
    %54 = arith.mulf %52, %53 : vector<1x32xf32>
    %c0_31 = arith.constant 0 : index
    %c0_32 = arith.constant 0 : index
    %55 = vector.load %arg8[%c0_31, %c0_32] : memref<1x32xf32, #tpu.memory_space<vmem>>, vector<1x32xf32>
    %56 = arith.mulf %43, %54 : vector<1x32xf32>
    %57 = arith.subf %55, %56 : vector<1x32xf32>
    %58 = vector.broadcast %54 : vector<1x32xf32> to vector<8x32xf32>
    %59 = arith.mulf %38, %58 : vector<8x32xf32>
    %60 = vector.broadcast %57 : vector<1x32xf32> to vector<8x32xf32>
    %61 = arith.addf %59, %60 : vector<8x32xf32>
    %c0_33 = arith.constant 0 : index
    %c0_34 = arith.constant 0 : index
    %62 = vector.load %arg9[%c0_33, %c0_34] : memref<32x32xf32, #tpu.memory_space<vmem>>, vector<32x32xf32>
    %cst_35 = arith.constant dense<0.000000e+00> : vector<8x32xf32>
    %63 = tpu.matmul %61, %62, %cst_35 {dimension_numbers = #tpu.dot_dimension_numbers<[1], [0], [0], [1], [0, 0, 1, 1], [], []>} : vector<8x32xf32>, vector<32x32xf32>, vector<8x32xf32> -> vector<8x32xf32>
    %c0_36 = arith.constant 0 : index
    %c0_37 = arith.constant 0 : index
    %64 = vector.load %arg10[%c0_36, %c0_37] : memref<1x32xf32, #tpu.memory_space<vmem>>, vector<1x32xf32>
    %65 = vector.broadcast %64 : vector<1x32xf32> to vector<8x32xf32>
    %66 = arith.addf %63, %65 : vector<8x32xf32>
    %cst_38 = arith.constant 0.000000e+00 : f32
    %67 = vector.broadcast %cst_38 : f32 to vector<8x32xf32>
    %68 = arith.maximumf %66, %67 : vector<8x32xf32>
    %cst_39 = arith.constant dense<0.000000e+00> : vector<1x32xf32>
    %69 = tpu.matmul %1, %68, %cst_39 {dimension_numbers = #tpu.dot_dimension_numbers<[1], [0], [0], [1], [0, 0, 1, 1], [], []>} : vector<1x8xf32>, vector<8x32xf32>, vector<1x32xf32> -> vector<1x32xf32>
    %70 = arith.mulf %68, %68 : vector<8x32xf32>
    %cst_40 = arith.constant dense<0.000000e+00> : vector<1x32xf32>
    %71 = tpu.matmul %1, %70, %cst_40 {dimension_numbers = #tpu.dot_dimension_numbers<[1], [0], [0], [1], [0, 0, 1, 1], [], []>} : vector<1x8xf32>, vector<8x32xf32>, vector<1x32xf32> -> vector<1x32xf32>
    %cst_41 = arith.constant 1.250000e-01 : f32
    %72 = vector.broadcast %cst_41 : f32 to vector<1x32xf32>
    %73 = arith.mulf %69, %72 : vector<1x32xf32>
    %cst_42 = arith.constant 1.250000e-01 : f32
    %74 = vector.broadcast %cst_42 : f32 to vector<1x32xf32>
    %75 = arith.mulf %71, %74 : vector<1x32xf32>
    %76 = arith.mulf %73, %73 : vector<1x32xf32>
    %77 = arith.subf %75, %76 : vector<1x32xf32>
    %cst_43 = arith.constant 0.000000e+00 : f32
    %78 = vector.broadcast %cst_43 : f32 to vector<1x32xf32>
    %79 = arith.maximumf %77, %78 : vector<1x32xf32>
    %cst_44 = arith.constant 9.99999974E-6 : f32
    %80 = vector.broadcast %cst_44 : f32 to vector<1x32xf32>
    %81 = arith.addf %79, %80 : vector<1x32xf32>
    %82 = math.rsqrt %81 : vector<1x32xf32>
    %c0_45 = arith.constant 0 : index
    %c0_46 = arith.constant 0 : index
    %83 = vector.load %arg11[%c0_45, %c0_46] : memref<1x32xf32, #tpu.memory_space<vmem>>, vector<1x32xf32>
    %84 = arith.mulf %82, %83 : vector<1x32xf32>
    %c0_47 = arith.constant 0 : index
    %c0_48 = arith.constant 0 : index
    %85 = vector.load %arg12[%c0_47, %c0_48] : memref<1x32xf32, #tpu.memory_space<vmem>>, vector<1x32xf32>
    %86 = arith.mulf %73, %84 : vector<1x32xf32>
    %87 = arith.subf %85, %86 : vector<1x32xf32>
    %88 = vector.broadcast %84 : vector<1x32xf32> to vector<8x32xf32>
    %89 = arith.mulf %68, %88 : vector<8x32xf32>
    %90 = vector.broadcast %87 : vector<1x32xf32> to vector<8x32xf32>
    %91 = arith.addf %89, %90 : vector<8x32xf32>
    %c0_49 = arith.constant 0 : index
    %c0_50 = arith.constant 0 : index
    %92 = vector.load %arg13[%c0_49, %c0_50] : memref<32x128xf32, #tpu.memory_space<vmem>>, vector<32x128xf32>
    %cst_51 = arith.constant dense<0.000000e+00> : vector<8x128xf32>
    %93 = tpu.matmul %91, %92, %cst_51 {dimension_numbers = #tpu.dot_dimension_numbers<[1], [0], [0], [1], [0, 0, 1, 1], [], []>} : vector<8x32xf32>, vector<32x128xf32>, vector<8x128xf32> -> vector<8x128xf32>
    %c0_52 = arith.constant 0 : index
    %c0_53 = arith.constant 0 : index
    %94 = vector.load %arg14[%c0_52, %c0_53] : memref<1x128xf32, #tpu.memory_space<vmem>>, vector<1x128xf32>
    %95 = vector.broadcast %94 : vector<1x128xf32> to vector<8x128xf32>
    %96 = arith.addf %93, %95 : vector<8x128xf32>
    %c0_54 = arith.constant 0 : index
    %c0_55 = arith.constant 0 : index
    %97 = vector.load %arg15[%c0_54, %c0_55] : memref<8x128xf32, #tpu.memory_space<vmem>>, vector<8x128xf32>
    tpu.vector_store %arg15[%c0_54, %c0_55], %96 {strides = array<i32>} : memref<8x128xf32, #tpu.memory_space<vmem>>, vector<8x128xf32>,
    return
  }
}

</mosaic_0001>

<bundles_post_ra>
// kernel: mlp_recognition_net_forward.1
= control target key start
LH: loop header
LB: loop body
LE: loop exit
PB: predicated region body
PF: predicated region fallthrough
CT: control target
= control target key end

     0   :  { %s1673_s0 = inlined_call_operand.hbm [shape: f32[8,16], index: 0, kind: input, shape index: {}]   ;;  %s1674_s1 = inlined_call_operand.hbm [shape: f32[16,32], index: 1, kind: input, shape index: {}]   ;;  %s1675_s2 = inlined_call_operand.vmem [shape: f32[1,32], index: 2, kind: input, shape index: {}]   ;;  %s1676_s3 = inlined_call_operand.vmem [shape: f32[1,32], index: 3, kind: input, shape index: {}]   ;;  %s1677_s4 = inlined_call_operand.hbm [shape: f32[1,32], index: 4, kind: input, shape index: {}]   ;;  %s1678_s5 = inlined_call_operand.hbm [shape: f32[32,32], index: 5, kind: input, shape index: {}]   ;;  %s1679_s6 = inlined_call_operand.hbm [shape: f32[1,32], index: 6, kind: input, shape index: {}]   ;;  %s1680_s7 = inlined_call_operand.hbm [shape: f32[1,32], index: 7, kind: input, shape index: {}]   ;;  %s1681_s8 = inlined_call_operand.hbm [shape: f32[1,32], index: 8, kind: input, shape index: {}]   ;;  %s1682_s9 = inlined_call_operand.vmem [shape: f32[32,32], index: 9, kind: input, shape index: {}]   ;;  %s1683_s10 = inlined_call_operand.vmem [shape: f32[1,32], index: 10, kind: input, shape index: {}]   ;;  %s1684_s11 = inlined_call_operand.vmem [shape: f32[1,32], index: 11, kind: input, shape index: {}]   ;;  %s1685_s12 = inlined_call_operand.vmem [shape: f32[1,32], index: 12, kind: input, shape index: {}]   ;;  %s1686_s13 = inlined_call_operand.hbm [shape: f32[32,128], index: 13, kind: input, shape index: {}]   ;;  %s1687_s14 = inlined_call_operand.vmem [shape: f32[1,128], index: 14, kind: input, shape index: {}]   ;;  %s1688_s15 = inlined_call_operand.hbm [shape: f32[8,128], index: 15, kind: output, shape index: {}]  }
   0x1   :  { %1690 = sst [smem:[#allocation23_spill]] %s1688_s15 }
   0x2   :  { %20 = vsyncpa [#allocation3], 0 }
   0x3   :  { %21 = vsyncpa [#allocation6], 0 }
   0x4   :  { %22 = vsyncpa [#allocation9], 0 }
   0x5   :  { %23 = vsyncpa [#allocation12], 0 }
   0x6   :  { %24 = vsyncpa [#allocation15], 0 }
   0x7   :  { %25 = vsyncpa [#allocation4], 0  ;;  %s1375_s18 = smov [#allocation5]   ;;  %s1165_s22 = scalar_lea.hbm %s1674_s1, 256 }
   0x8   :  { %s41_s19 = sshll.u32 %s1375_s18, 4  ;;  %p1166_p0 = scmp.ne.s32.totalorder %s1674_s1, %s1165_s22  ;;  %s42_s19 = int_to_ptr.vmem [resolvable:$true] %s41_s19 }
   0x9   :  { %p1169_p1 = scmp.lt.u32.totalorder %s1165_s22, %s1674_s1 }
   0xb   :  { %p1171_p2 = pnand %p1169_p1, %p1166_p0 }
   0xd   :  { %1174 = shalt.err (!%p1171_p2)
}
   0xe   :  { %s1175_s27 = scalar_lea.vmem %s42_s19, 256  ;;  %p1180_p4 = scmp.lt.s32.totalorder %s42_s19, %s42_s19 }
   0xf   :  { %p1176_p3 = scmp.ne.s32.totalorder %s42_s19, %s1175_s27  ;;  %p1181_p5 = scmp.lt.s32.totalorder %s1175_s27, %s1175_s27 }
  0x11   :  { %p1182_p6 = por %p1181_p5, %p1180_p4 }
  0x13   :  { %p1183_p7 = pnand %p1182_p6, %p1176_p3 }
  0x15   :  { %1186 = shalt.err (!%p1183_p7)
}
  0x16   :  { %s1376_s28 = smov 128   ;;  %s1377_s29 = smov 8  }
  0x17   :  { %47 = dma.hbm_to_vmem [thread:$0]  %s1674_s1, 256, %s42_s19, [#allocation6], %s1376_s28, %s1376_s28, %s1377_s29  }
  0x18   :  { %s1378_s17 = smov [#allocation8]   ;;  %s1379_s20 = smov [#allocation11]  }
  0x19   :  { %s67_s18 = sshll.u32 %s1378_s17, 4  ;;  %s90_s21 = sshll.u32 %s1379_s20, 4  ;;  %s68_s18 = int_to_ptr.vmem [resolvable:$true] %s67_s18  ;;  %s91_s21 = int_to_ptr.vmem [resolvable:$true] %s90_s21 }
  0x1a   :  { %s1187_s24 = scalar_lea.hbm %s1678_s5, 512 }
  0x1b   :  { %p1188_p8 = scmp.ne.s32.totalorder %s1678_s5, %s1187_s24  ;;  %p1191_p9 = scmp.lt.u32.totalorder %s1187_s24, %s1678_s5 }
  0x1d   :  { %p1193_p10 = pnand %p1191_p9, %p1188_p8 }
  0x1f   :  { %1196 = shalt.err (!%p1193_p10)
}
  0x20   :  { %s1197_s1 = scalar_lea.vmem %s68_s18, 512  ;;  %p1202_p12 = scmp.lt.s32.totalorder %s68_s18, %s68_s18 }
  0x21   :  { %p1198_p11 = scmp.ne.s32.totalorder %s68_s18, %s1197_s1  ;;  %p1203_p13 = scmp.lt.s32.totalorder %s1197_s1, %s1197_s1 }
  0x23   :  { %p1204_p0 = por %p1203_p13, %p1202_p12 }
  0x25   :  { %p1205_p1 = pnand %p1204_p0, %p1198_p11 }
  0x27   :  { %1208 = shalt.err (!%p1205_p1)
}
  0x28   :  { %73 = dma.hbm_to_vmem [thread:$0]  %s1678_s5, 512, %s68_s18, [#allocation9], %s1376_s28, %s1376_s28, %s1377_s29  }
  0x29   :  { %s1209_s17 = scalar_lea.hbm %s1680_s7, 16 }
  0x2a   :  { %p1210_p2 = scmp.ne.s32.totalorder %s1680_s7, %s1209_s17  ;;  %p1213_p3 = scmp.lt.u32.totalorder %s1209_s17, %s1680_s7 }
  0x2c   :  { %p1215_p4 = pnand %p1213_p3, %p1210_p2 }
  0x2e   :  { %1218 = shalt.err (!%p1215_p4)
}
  0x2f   :  { %s1219_s25 = scalar_lea.vmem %s91_s21, 16  ;;  %s1223_s26 = scalar_lea.vmem %s91_s21, 32 }
  0x30   :  { %p1220_p5 = scmp.ne.s32.totalorder %s91_s21, %s1219_s25  ;;  %p1224_p6 = scmp.lt.s32.totalorder %s91_s21, %s91_s21 }
  0x31   :  { %p1225_p7 = scmp.lt.s32.totalorder %s1223_s26, %s1219_s25 }
  0x33   :  { %p1226_p8 = por %p1225_p7, %p1224_p6 }
  0x35   :  { %p1227_p9 = pnand %p1226_p8, %p1220_p5 }
  0x37   :  { %1230 = shalt.err (!%p1227_p9)
}
  0x38   :  { %93 = dma.hbm_to_vmem [thread:$0]  %s1680_s7, 16, %s91_s21, [#allocation12]  }
  0x39   :  { %s1380_s27 = smov [#allocation2]   ;;  %s1381_s19 = smov [#allocation7]  }
  0x3a   :  { %s32_s1 = sshll.u32 %s1380_s27, 4  ;;  %s58_s30 = sshll.u32 %s1381_s19, 4  ;;  %s33_s1 = int_to_ptr.vmem [resolvable:$true] %s32_s1  ;;  %s59_s30 = int_to_ptr.vmem [resolvable:$true] %s58_s30 }
  0x3b   :  { %s1231_s17 = scalar_lea.hbm %s1673_s0, 128 }
  0x3c   :  { %p1232_p10 = scmp.ne.s32.totalorder %s1673_s0, %s1231_s17  ;;  %p1235_p11 = scmp.lt.u32.totalorder %s1231_s17, %s1673_s0 }
  0x3e   :  { %p1237_p12 = pnand %p1235_p11, %p1232_p10 }
  0x40   :  { %1240 = shalt.err (!%p1237_p12)
}
  0x41   :  { %s1241_s7 = scalar_lea.vmem %s33_s1, 128  ;;  %p1246_p0 = scmp.lt.s32.totalorder %s33_s1, %s33_s1 }
  0x42   :  { %p1242_p13 = scmp.ne.s32.totalorder %s33_s1, %s1241_s7  ;;  %p1247_p1 = scmp.lt.s32.totalorder %s1241_s7, %s1241_s7 }
  0x44   :  { %p1248_p2 = por %p1247_p1, %p1246_p0 }
  0x46   :  { %p1249_p3 = pnand %p1248_p2, %p1242_p13 }
  0x48   :  { %1252 = shalt.err (!%p1249_p3)
}
  0x49   :  { %35 = dma.hbm_to_vmem [thread:$0]  %s1673_s0, 128, %s33_s1, [#allocation3]  }
  0x4a   :  { %s1253_s18 = scalar_lea.hbm %s1677_s4, 16 }
  0x4b   :  { %p1254_p4 = scmp.ne.s32.totalorder %s1677_s4, %s1253_s18  ;;  %p1257_p5 = scmp.lt.u32.totalorder %s1253_s18, %s1677_s4 }
  0x4d   :  { %p1259_p6 = pnand %p1257_p5, %p1254_p4 }
  0x4f   :  { %1262 = shalt.err (!%p1259_p6)
}
  0x50   :  { %s1263_s17 = scalar_lea.vmem %s59_s30, 16  ;;  %s1267_s20 = scalar_lea.vmem %s59_s30, 32 }
  0x51   :  { %p1264_p7 = scmp.ne.s32.totalorder %s59_s30, %s1263_s17  ;;  %p1268_p8 = scmp.lt.s32.totalorder %s59_s30, %s59_s30 }
  0x52   :  { %p1269_p9 = scmp.lt.s32.totalorder %s1267_s20, %s1263_s17 }
  0x54   :  { %p1270_p10 = por %p1269_p9, %p1268_p8 }
  0x56   :  { %p1271_p11 = pnand %p1270_p10, %p1264_p7 }
  0x58   :  { %1274 = shalt.err (!%p1271_p11)
}
  0x59   :  { %61 = dma.hbm_to_vmem [thread:$0]  %s1677_s4, 16, %s59_s30, [#allocation6]  }
  0x5a   :  { %s1382_s22 = smov [#allocation10]   ;;  %s1383_s24 = smov [#allocation13]  }
  0x5b   :  { %s80_s23 = sshll.u32 %s1382_s22, 4  ;;  %s100_s7 = sshll.u32 %s1383_s24, 4  ;;  %s81_s23 = int_to_ptr.vmem [resolvable:$true] %s80_s23  ;;  %s101_s7 = int_to_ptr.vmem [resolvable:$true] %s100_s7 }
  0x5c   :  { %s1275_s26 = scalar_lea.hbm %s1679_s6, 16 }
  0x5d   :  { %p1276_p12 = scmp.ne.s32.totalorder %s1679_s6, %s1275_s26  ;;  %p1279_p13 = scmp.lt.u32.totalorder %s1275_s26, %s1679_s6 }
  0x5f   :  { %p1281_p0 = pnand %p1279_p13, %p1276_p12 }
  0x61   :  { %1284 = shalt.err (!%p1281_p0)
}
  0x62   :  { %s1285_s4 = scalar_lea.vmem %s81_s23, 16  ;;  %s1289_s30 = scalar_lea.vmem %s81_s23, 32 }
  0x63   :  { %p1286_p1 = scmp.ne.s32.totalorder %s81_s23, %s1285_s4  ;;  %p1290_p2 = scmp.lt.s32.totalorder %s81_s23, %s81_s23 }
  0x64   :  { %p1291_p3 = scmp.lt.s32.totalorder %s1289_s30, %s1285_s4 }
  0x66   :  { %p1292_p4 = por %p1291_p3, %p1290_p2 }
  0x68   :  { %p1293_p5 = pnand %p1292_p4, %p1286_p1 }
  0x6a   :  { %1296 = shalt.err (!%p1293_p5)
}
  0x6b   :  { %83 = dma.hbm_to_vmem [thread:$0]  %s1679_s6, 16, %s81_s23, [#allocation9]  }
  0x6c   :  { %s1297_s0 = scalar_lea.hbm %s1681_s8, 16 }
  0x6d   :  { %p1298_p6 = scmp.ne.s32.totalorder %s1681_s8, %s1297_s0  ;;  %p1301_p7 = scmp.lt.u32.totalorder %s1297_s0, %s1681_s8 }
  0x6f   :  { %p1303_p8 = pnand %p1301_p7, %p1298_p6 }
  0x71   :  { %1306 = shalt.err (!%p1303_p8)
}
  0x72   :  { %s1307_s25 = scalar_lea.vmem %s101_s7, 16  ;;  %s1311_s26 = scalar_lea.vmem %s101_s7, 32 }
  0x73   :  { %p1308_p9 = scmp.ne.s32.totalorder %s101_s7, %s1307_s25  ;;  %p1312_p10 = scmp.lt.s32.totalorder %s101_s7, %s101_s7 }
  0x74   :  { %p1313_p11 = scmp.lt.s32.totalorder %s1311_s26, %s1307_s25 }
  0x76   :  { %p1314_p12 = por %p1313_p11, %p1312_p10 }
  0x78   :  { %p1315_p13 = pnand %p1314_p12, %p1308_p9 }
  0x7a   :  { %1318 = shalt.err (!%p1315_p13)
}
  0x7b   :  { %103 = dma.hbm_to_vmem [thread:$0]  %s1681_s8, 16, %s101_s7, [#allocation12]  }
  0x7c   :  { %s1384_s5 = smov [#allocation14]   ;;  %s1319_s4 = scalar_lea.hbm %s1686_s13, 512 }
  0x7d   :  { %s117_s18 = sshll.u32 %s1384_s5, 4  ;;  %p1320_p0 = scmp.ne.s32.totalorder %s1686_s13, %s1319_s4  ;;  %s118_s18 = int_to_ptr.vmem [resolvable:$true] %s117_s18 }
  0x7e   :  { %p1323_p1 = scmp.lt.u32.totalorder %s1319_s4, %s1686_s13 }
  0x80   :  { %p1325_p2 = pnand %p1323_p1, %p1320_p0 }
  0x82   :  { %1328 = shalt.err (!%p1325_p2)
}
  0x83   :  { %s1329_s20 = scalar_lea.vmem %s118_s18, 512  ;;  %p1334_p4 = scmp.lt.s32.totalorder %s118_s18, %s118_s18 }
  0x84   :  { %p1330_p3 = scmp.ne.s32.totalorder %s118_s18, %s1329_s20  ;;  %p1335_p5 = scmp.lt.s32.totalorder %s1329_s20, %s1329_s20 }
  0x86   :  { %p1336_p6 = por %p1335_p5, %p1334_p4 }
  0x88   :  { %p1337_p7 = pnand %p1336_p6, %p1330_p3 }
  0x8a   :  { %1340 = shalt.err (!%p1337_p7)
}
  0x8b   :  { %123 = dma.hbm_to_vmem [thread:$0]  %s1686_s13, 512, %s118_s18, [#allocation15], %s1376_s28, %s1376_s28, %s1377_s29  }
  0x8c   :  { %1363 = dma.done.wait [#allocation3], 128  }
  0x8d   :  { %1364 = vsyncadd [#allocation3], 4294967168 }
  0x8e   :  { %1365 = dma.done.wait [#allocation6], 272  }
  0x8f   :  { %1366 = vsyncadd [#allocation6], 4294967024 }
  0x90   :  { %1367 = dma.done.wait [#allocation9], 528  }
  0x91   :  { %1368 = vsyncadd [#allocation9], 4294966768 }
  0x92   :  { %1369 = dma.done.wait [#allocation12], 32  }
  0x93   :  { %1370 = vsyncadd [#allocation12], 4294967264 }
  0x94   :  { %1371 = dma.done.wait [#allocation15], 512  }
  0x95   :  { %1372 = vsyncadd [#allocation15], 4294966784  ;;  %v1385_v0 = vmov 0.0|0.0   ;;  %vm1386_vm0 = vmmov 0   ;;  %v1387_v1 = vmov 0.0   ;;  %v151_v2 = vld [vmem:[#allocation5] sm:$0xff]  ;;  %v392_v29 = vlaneseq }
  0x96   :  { %1123 = vmatprep.subr.bf16.mxu0 %v1385_v0  ;;  %1057 = vmatprep.mubr.msk.f32.mxu0 %vm1386_vm0, %v1387_v1  ;;  %v152_v3 = vld [vmem:[#allocation5 + $0x8] sm:$0xff]  ;;  %v150_v5 = vld [vmem:[#allocation2] sm:$0xff]  ;;  %vm160_vm1 = vcmask 130048   ;;  %vm235_vm2 = vcmask 64512   ;;  %v1388_v12 = vmov 1.0   ;;  %vm415_vm3 = vcmask 261120  }
  0x97   :  { %1060 = vmatprep.subr.mxu1 %v1387_v1  ;;  %1062 = vmatprep.mubr.msk.f32.mxu1 %vm1386_vm0, %v1387_v1  ;;  %v1124_v4 = vpack.c.bf16 %v152_v3, %v151_v2  ;;  %v1009_v6 = vld [vmem:[%s1675_s2] ss:$0 sm:$0xff]  ;;  %v405_v14 = vld [vmem:[#allocation8 + $0x8] sm:$0xff]  ;;  %v406_v16 = vld [vmem:[#allocation8 + $0x10] sm:$0xff]  ;;  %v393_v30 = vshrl.u32 %v392_v29, 7 }
  0x98   :  { %v404_v13 = vld [vmem:[#allocation8] sm:$0xff]  ;;  %v407_v17 = vld [vmem:[#allocation8 + $0x18] sm:$0xff]  ;;  %v656_v49 = vld [vmem:[%s1682_s9 + $0x8] sm:$0xff] }
  0x99   :  { %1125 = vmatpush3.bf16.msra.mxu0 %v1124_v4  ;;  %v1127_v15 = vpack.c.bf16 %v405_v14, %v404_v13  ;;  %v1130_v18 = vpack.c.bf16 %v407_v17, %v406_v16  ;;  %v387_v31 = vld [vmem:[%s1676_s3] sm:$0x1]  ;;  %v1602_v32 = vsub.s32 0, %v393_v30  ;;  %v389_v35 = vld [vmem:[#allocation7] sm:$0x1]  ;;  %v657_v51 = vld [vmem:[%s1682_s9 + $0x10] sm:$0xff] }
  0x9a   :  { %1126 = vmatprep.subr.bf16.mxu0 %v1385_v0  ;;  %v1013_v42 = vld [vmem:[#allocation10] ss:$0 sm:$0xff]  ;;  %v655_v48 = vld [vmem:[%s1682_s9] sm:$0xff]  ;;  %v638_v2 = vld [vmem:[#allocation11] sm:$0x1] }
  0x9b   :  { %v1133_v50 = vpack.c.bf16 %v656_v49, %v655_v48  ;;  %v658_v52 = vld [vmem:[%s1682_s9 + $0x18] sm:$0xff]  ;;  %v1017_v13 = vld [vmem:[%s1683_s10] ss:$0 sm:$0xff] }
  0x9c   :  { %1058 = vmatmul.mubr.msk.f32.vlgmr.msra.gmra.mrb[0].mxu0 %vm160_vm1, %v150_v5  ;;  %v1136_v53 = vpack.c.bf16 %v658_v52, %v657_v51  ;;  %v640_v5 = vld [vmem:[#allocation13] sm:$0x1] }
  0x9d   :  { %1078 = vmatprep.mubr.msk.f32.mxu0 %vm1386_vm0, %v1387_v1  ;;  %1128 = vmatpush3.bf16.msra.mxu0 %v1127_v15 }
  0x9e   :  { %1129 = vmatprep.subr.bf16.mxu0 %v1385_v0 }
  0xa1   :  { %1131 = vmatpush3.bf16.msra.mxu0 %v1130_v18 }
  0xa2   :  { %1132 = vmatprep.subr.bf16.mxu0 %v1385_v0 }
 0x16f   :  { %v230_v7 = vpop.f32.mrb[0].mxu0 }
 0x170   :  { %v231_v8 = vadd.f32 %v1009_v6, %v230_v7  ;;  %v1059_v9 = vpop.f32.mrb[1].mxu0 }
 0x172   :  { %v234_v10 = vmax.f32 %v231_v8, 0.0 }
 0x174   :  { %v309_v11 = vmul.f32 %v234_v10, %v234_v10  ;;  %1061 = vmatpush3.msra.mxu1 %v234_v10 }
 0x175   :  { %1063 = vmatmul.mubr.msk.f32.vlgmr.msra.gmra.mrb[0].mxu1 %vm235_vm2, %v1388_v12  ;;  %1065 = vmatprep.subr.mxu1 %v1387_v1 }
 0x176   :  { %1066 = vmatpush3.msra.mxu1 %v309_v11  ;;  %1067 = vmatprep.mubr.msk.f32.mxu1 %vm1386_vm0, %v1387_v1 }
 0x177   :  { %1081 = vmatprep.subr.mxu1 %v1387_v1 }
 0x179   :  { %1068 = vmatmul.mubr.msk.f32.vlgmr.msra.gmra.mrb[2].mxu1 %vm235_vm2, %v1388_v12 }
 0x17a   :  { %1083 = vmatprep.mubr.msk.f32.mxu1 %vm1386_vm0, %v1387_v1 }
 0x248   :  { %v305_v19 = vpop.f32.mrb[0].mxu1 }
 0x249   :  { %v380_v20 = vmul.f32 0.125, %v305_v19  ;;  %v1064_v21 = vpop.f32.mrb[1].mxu1  ;;  %v905_v19 = vld [vmem:[#allocation14] sm:$0xff] }
 0x24b   :  { %v382_v23 = vmul.f32 %v380_v20, %v380_v20 }
 0x24c   :  { %v376_v22 = vpop.f32.mrb[2].mxu1 }
 0x24d   :  { %v381_v24 = vmul.f32 0.125, %v376_v22  ;;  %v1069_v25 = vpop.f32.mrb[3].mxu1  ;;  %v907_v22 = vld [vmem:[#allocation14 + $0x10] sm:$0xff] }
 0x24f   :  { %v383_v26 = vsub.f32 %v381_v24, %v382_v23  ;;  %v908_v23 = vld [vmem:[#allocation14 + $0x18] sm:$0xff] }
 0x250   :  { %v1142_v24 = vpack.c.bf16 %v908_v23, %v907_v22 }
 0x251   :  { %v384_v27 = vmax.f32 %v383_v26, 0.0 }
 0x253   :  { %v385_v28 = vadd.f32 1e-05, %v384_v27 }
 0x255   :  { %1159 = vrsqrt.f32 %v385_v28 }
 0x25f   :  { %v1160_v33 = vpop.eup %1159 }
 0x260   :  { %v388_v34 = vmul.f32 %v1160_v33, %v387_v31 }
 0x262   :  { %v390_v36 = vmul.f32 %v388_v34, %v380_v20  ;;  %v395_v37 = vrot.slane %v388_v34, %v1602_v32  ;;  %v906_v20 = vld [vmem:[#allocation14 + $0x8] sm:$0xff]  ;;  %v888_v34 = vld [vmem:[%s1684_s11] sm:$0x1]  ;;  %s1389_s11 = smov [#allocation16]  }
 0x263   :  { %v1139_v21 = vpack.c.bf16 %v906_v20, %v905_v19  ;;  %s996_s4 = sshll.u32 %s1389_s11, 4  ;;  %s997_s4 = int_to_ptr.vmem [resolvable:$true] %s996_s4 }
 0x264   :  { %v391_v38 = vsub.f32 %v389_v35, %v390_v36  ;;  %v396_v39 = vmul.f32 %v395_v37, %v234_v10  ;;  %p1346_p9 = scmp.lt.s32.totalorder %s997_s4, %s997_s4 }
 0x266   :  { %v401_v40 = vrot.slane %v391_v38, %v1602_v32 }
 0x268   :  { %v403_v41 = vadd.f32 %v401_v40, %v396_v39 }
 0x26a   :  { %1079 = vmatmul.mubr.msk.f32.vlgmr.msra.gmra.mrb[2].mxu0 %vm415_vm3, %v403_v41 }
 0x26b   :  { %1099 = vmatprep.mubr.msk.f32.mxu0 %vm1386_vm0, %v1387_v1  ;;  %1134 = vmatpush3.bf16.msra.mxu0 %v1133_v50 }
 0x26c   :  { %1135 = vmatprep.subr.bf16.mxu0 %v1385_v0 }
 0x26f   :  { %1137 = vmatpush3.bf16.msra.mxu0 %v1136_v53 }
 0x270   :  { %1138 = vmatprep.subr.bf16.mxu0 %v1385_v0 }
 0x33d   :  { %v485_v43 = vpop.f32.mrb[2].mxu0 }
 0x33e   :  { %v486_v44 = vadd.f32 %v1013_v42, %v485_v43  ;;  %v1080_v45 = vpop.f32.mrb[3].mxu0  ;;  %v1021_v43 = vld [vmem:[%s1687_s14] ss:$0 sm:$0xff] }
 0x340   :  { %v489_v46 = vmax.f32 %v486_v44, 0.0 }
 0x342   :  { %v560_v47 = vmul.f32 %v489_v46, %v489_v46  ;;  %1082 = vmatpush3.msra.mxu1 %v489_v46 }
 0x343   :  { %1084 = vmatmul.mubr.msk.f32.vlgmr.msra.gmra.mrb[4].mxu1 %vm235_vm2, %v1388_v12  ;;  %1086 = vmatprep.subr.mxu1 %v1387_v1 }
 0x344   :  { %1087 = vmatpush3.msra.mxu1 %v560_v47  ;;  %1088 = vmatprep.mubr.msk.f32.mxu1 %vm1386_vm0, %v1387_v1 }
 0x345   :  { %1102 = vmatprep.subr.mxu1 %v1387_v1 }
 0x347   :  { %1089 = vmatmul.mubr.msk.f32.vlgmr.msra.gmra.mrb[6].mxu1 %vm235_vm2, %v1388_v12 }
 0x348   :  { %1104 = vmatprep.mubr.msk.f32.mxu1 %vm1386_vm0, %v1387_v1 }
 0x416   :  { %v556_v54 = vpop.f32.mrb[4].mxu1 }
 0x417   :  { %v631_v55 = vmul.f32 0.125, %v556_v54  ;;  %v1085_v56 = vpop.f32.mrb[5].mxu1 }
 0x419   :  { %v633_v58 = vmul.f32 %v631_v55, %v631_v55 }
 0x41a   :  { %v627_v57 = vpop.f32.mrb[6].mxu1 }
 0x41b   :  { %v632_v59 = vmul.f32 0.125, %v627_v57  ;;  %v1090_v60 = vpop.f32.mrb[7].mxu1 }
 0x41d   :  { %v634_v61 = vsub.f32 %v632_v59, %v633_v58 }
 0x41f   :  { %v635_v62 = vmax.f32 %v634_v61, 0.0 }
 0x421   :  { %v636_v63 = vadd.f32 1e-05, %v635_v62 }
 0x423   :  { %1161 = vrsqrt.f32 %v636_v63 }
 0x42d   :  { %v1162_v3 = vpop.eup %1161 }
 0x42e   :  { %v639_v4 = vmul.f32 %v1162_v3, %v638_v2 }
 0x430   :  { %v641_v6 = vmul.f32 %v639_v4, %v631_v55  ;;  %v646_v7 = vrot.slane %v639_v4, %v1602_v32 }
 0x432   :  { %v642_v8 = vsub.f32 %v640_v5, %v641_v6  ;;  %v647_v9 = vmul.f32 %v646_v7, %v489_v46 }
 0x434   :  { %v652_v10 = vrot.slane %v642_v8, %v1602_v32 }
 0x436   :  { %v654_v11 = vadd.f32 %v652_v10, %v647_v9 }
 0x438   :  { %1100 = vmatmul.mubr.msk.f32.vlgmr.msra.gmra.mrb[4].mxu0 %vm415_vm3, %v654_v11 }
 0x439   :  { %1120 = vmatprep.mubr.msk.f32.mxu0 %vm1386_vm0, %v1387_v1  ;;  %1140 = vmatpush3.bf16.msra.mxu0 %v1139_v21 }
 0x43a   :  { %1141 = vmatprep.subr.bf16.mxu0 %v1385_v0  ;;  %v890_v0 = vld [vmem:[%s1685_s12] sm:$0x1]  ;;  %s1341_s12 = scalar_lea.vmem %s997_s4, 128 }
 0x43b   :  { %p1342_p8 = scmp.ne.s32.totalorder %s997_s4, %s1341_s12  ;;  %p1347_p10 = scmp.lt.s32.totalorder %s1341_s12, %s1341_s12 }
 0x43d   :  { %1143 = vmatpush3.bf16.msra.mxu0 %v1142_v24  ;;  %p1348_p11 = por %p1347_p10, %p1346_p9 }
 0x43f   :  { %p1349_p12 = pnand %p1348_p11, %p1342_p8 }
 0x50b   :  { %v735_v14 = vpop.f32.mrb[4].mxu0 }
 0x50c   :  { %v736_v15 = vadd.f32 %v1017_v13, %v735_v14  ;;  %v1101_v16 = vpop.f32.mrb[5].mxu0 }
 0x50e   :  { %v739_v17 = vmax.f32 %v736_v15, 0.0 }
 0x510   :  { %v810_v18 = vmul.f32 %v739_v17, %v739_v17  ;;  %1103 = vmatpush3.msra.mxu1 %v739_v17 }
 0x511   :  { %1105 = vmatmul.mubr.msk.f32.vlgmr.msra.gmra.mrb[8].mxu1 %vm235_vm2, %v1388_v12  ;;  %1107 = vmatprep.subr.mxu1 %v1387_v1 }
 0x512   :  { %1108 = vmatpush3.msra.mxu1 %v810_v18  ;;  %1109 = vmatprep.mubr.msk.f32.mxu1 %vm1386_vm0, %v1387_v1 }
 0x515   :  { %1110 = vmatmul.mubr.msk.f32.vlgmr.msra.gmra.mrb[10].mxu1 %vm235_vm2, %v1388_v12 }
 0x5e4   :  { %v806_v25 = vpop.f32.mrb[8].mxu1 }
 0x5e5   :  { %v881_v26 = vmul.f32 0.125, %v806_v25  ;;  %v1106_v27 = vpop.f32.mrb[9].mxu1 }
 0x5e7   :  { %v883_v29 = vmul.f32 %v881_v26, %v881_v26 }
 0x5e8   :  { %v877_v28 = vpop.f32.mrb[10].mxu1 }
 0x5e9   :  { %v882_v30 = vmul.f32 0.125, %v877_v28  ;;  %v1111_v1 = vpop.f32.mrb[11].mxu1 }
 0x5eb   :  { %v884_v31 = vsub.f32 %v882_v30, %v883_v29 }
 0x5ed   :  { %v885_v33 = vmax.f32 %v884_v31, 0.0 }
 0x5ef   :  { %v886_v12 = vadd.f32 1e-05, %v885_v33 }
 0x5f1   :  { %1163 = vrsqrt.f32 %v886_v12 }
 0x5fb   :  { %v1164_v35 = vpop.eup %1163 }
 0x5fc   :  { %v889_v36 = vmul.f32 %v1164_v35, %v888_v34 }
 0x5fe   :  { %v891_v37 = vmul.f32 %v889_v36, %v881_v26  ;;  %v896_v38 = vrot.slane %v889_v36, %v1602_v32 }
 0x600   :  { %v892_v39 = vsub.f32 %v890_v0, %v891_v37  ;;  %v897_v40 = vmul.f32 %v896_v38, %v739_v17 }
 0x602   :  { %v902_v41 = vrot.slane %v892_v39, %v1602_v32 }
 0x604   :  { %v904_v42 = vadd.f32 %v902_v41, %v897_v40 }
 0x606   :  { %1121 = vmatmul.mubr.msk.f32.vlgmr.msra.gmra.mrb[6].mxu0 %vm415_vm3, %v904_v42 }
 0x6d9   :  { %v985_v44 = vpop.f32.mrb[6].mxu0 }
 0x6da   :  { %v986_v45 = vadd.f32 %v1021_v43, %v985_v44  ;;  %v1122_v46 = vpop.f32.mrb[7].mxu0 }
 0x6dc   :  { %989 = vst [vmem:[#allocation16] sm:$0xff] %v986_v45 }
 0x6dd   :  { %1352 = shalt.err (!%p1349_p12)
}
 0x6de   :  { %s1691_s15 = sld [smem:[#allocation23_spill]] }
 0x6e4   :  { %s1353_s17 = scalar_lea.hbm %s1691_s15, 128 }
 0x6e5   :  { %p1354_p13 = scmp.ne.s32.totalorder %s1691_s15, %s1353_s17  ;;  %p1357_p0 = scmp.lt.u32.totalorder %s1353_s17, %s1691_s15 }
 0x6e7   :  { %p1359_p1 = pnand %p1357_p0, %p1354_p13 }
 0x6e9   :  { %1362 = shalt.err (!%p1359_p1)
}
 0x6ea   :  { %999 = dma.vmem_to_hbm [thread:$0]  %s997_s4, 128, %s1691_s15, [#allocation4]  }
 0x6eb   :  { %1373 = dma.done.wait [#allocation4], 128  }
 0x6ec   :  { %1374 = vsyncadd [#allocation4], 4294967168 }
 0x6ed   :  { %1003 = vsyncpa [#allocation3], 1 }
 0x6ee   :  { %1004 = vsyncpa [#allocation6], 1 }
 0x6ef   :  { %1005 = vsyncpa [#allocation9], 1 }
 0x6f0   :  { %1006 = vsyncpa [#allocation12], 1 }
 0x6f1   :  { %1007 = vsyncpa [#allocation15], 1 }
 0x6f2   :  { %1008 = vsyncpa [#allocation4], 1 }

</bundles_post_ra>
